<compile_context>
chip_gen: v6e
topology: v6e:2x2x1
jax: 0.10.0
libtpu: 0.0.40
codegen_flags: <defaults>
</compile_context>

<pallas_src>
import functools

import jax
import jax.numpy as jnp
from jax.experimental import pallas as pl
from jax.experimental.pallas import tpu as pltpu

IN_DIM = 28 * 28      # 784
K_PAD = 896           # 7 * 128 (padded contraction dim for layer 1)
H1 = 256
H2 = 128
OUT = 10
OUT_PAD = 128         # lane-dense padded output width


def _round_up(x, m):
    return ((x + m - 1) // m) * m


def pc_forward_kernel(x_ref, w1_ref, b1_ref, w2_ref, b2_ref, w3_ref, b3_ref, out_ref):
    # layer1: relu(x @ W1 + b1) -- bf16 MXU operands, f32 accumulate, f32 elementwise
    h1 = jnp.dot(x_ref[...], w1_ref[...], preferred_element_type=jnp.float32)
    h1 = jnp.maximum(h1 + b1_ref[...], 0.0)
    # layer2: relu(h1 @ W2 + b2)
    h2 = jnp.dot(h1.astype(jnp.bfloat16), w2_ref[...],
                 preferred_element_type=jnp.float32)
    h2 = jnp.maximum(h2 + b2_ref[...], 0.0)
    # layer3 (no activation, padded to 128 lanes): h2 @ W3 + b3
    out = jnp.dot(h2.astype(jnp.bfloat16), w3_ref[...],
                  preferred_element_type=jnp.float32) + b3_ref[...]
    out_ref[...] = out.astype(out_ref.dtype)


@jax.jit
def pc_forward(x, w1, b1, w2, b2, w3, b3):
    """x: [B, 1, 28, 28] (NCHW like the PyTorch module) or already-flat [B, 784].

    Weights are given in kernel layout: w{i}: [in_features, out_features] (already
    transposed vs. torch.nn.Linear), biases: [out_features].
    """
    b = x.shape[0]
    x_flat = x.reshape(b, -1).astype(jnp.float32)

    # Batch tile: multiple of 8 (f32 sublane); cap at 256 rows per grid step.
    tile_b = 256 if b >= 256 else _round_up(b, 8)
    b_pad = _round_up(b, tile_b)

    # Pad batch and contraction dims with zeros (padded rows are sliced off below;
    # padded K columns meet zero rows of the padded w1, so results are unchanged).
    x_p = jnp.pad(x_flat, ((0, b_pad - b), (0, K_PAD - IN_DIM))).astype(jnp.bfloat16)

    w1_p = jnp.pad(w1, ((0, K_PAD - IN_DIM), (0, 0))).astype(jnp.bfloat16)
    w2_b = w2.astype(jnp.bfloat16)
    w3_p = jnp.pad(w3, ((0, 0), (0, OUT_PAD - OUT))).astype(jnp.bfloat16)

    b1_r = b1.reshape(1, H1).astype(jnp.float32)
    b2_r = b2.reshape(1, H2).astype(jnp.float32)
    b3_r = jnp.pad(b3.reshape(1, OUT), ((0, 0), (0, OUT_PAD - OUT))).astype(jnp.float32)

    grid = (b_pad // tile_b,)

    flops = 2 * b_pad * (K_PAD * H1 + H1 * H2 + H2 * OUT_PAD)
    bytes_accessed = (
        x_p.size * 2 + w1_p.size * 2 + w2_b.size * 2 + w3_p.size * 2
        + (b1_r.size + b2_r.size + b3_r.size) * 4 + b_pad * OUT_PAD * 4
    )

    out_padded = pl.pallas_call(
        pc_forward_kernel,
        out_shape=jax.ShapeDtypeStruct((b_pad, OUT_PAD), jnp.float32),
        grid=grid,
        in_specs=[
            pl.BlockSpec((tile_b, K_PAD), lambda i: (i, 0)),   # x tile (pipelined)
            pl.BlockSpec((K_PAD, H1), lambda i: (0, 0)),       # W1 resident
            pl.BlockSpec((1, H1), lambda i: (0, 0)),           # b1 resident
            pl.BlockSpec((H1, H2), lambda i: (0, 0)),          # W2 resident
            pl.BlockSpec((1, H2), lambda i: (0, 0)),           # b2 resident
            pl.BlockSpec((H2, OUT_PAD), lambda i: (0, 0)),     # W3 resident (padded)
            pl.BlockSpec((1, OUT_PAD), lambda i: (0, 0)),      # b3 resident (padded)
        ],
        out_specs=pl.BlockSpec((tile_b, OUT_PAD), lambda i: (i, 0)),
        compiler_params=pltpu.CompilerParams(
            dimension_semantics=("parallel",),
            vmem_limit_bytes=32 * 1024 * 1024,
        ),
        cost_estimate=pl.CostEstimate(
            flops=flops, transcendentals=0, bytes_accessed=bytes_accessed),
    )(x_p, w1_p, b1_r, w2_b, b2_r, w3_p, b3_r)

    return out_padded[:b, :OUT]


def init_linear(key, fan_in, fan_out):
    """Deterministic init mimicking torch.nn.Linear defaults (uniform +/-1/sqrt(fan_in)).

    Returns weight already transposed to [fan_in, fan_out] (kernel layout)."""
    kw, kb = jax.random.split(key)
    bound = 1.0 / jnp.sqrt(float(fan_in))
    w = jax.random.uniform(kw, (fan_in, fan_out), jnp.float32, -bound, bound)
    bias = jax.random.uniform(kb, (fan_out,), jnp.float32, -bound, bound)
    return w, bias


if __name__ == "__main__":
    key = jax.random.PRNGKey(0)
    k_x, k1, k2, k3 = jax.random.split(key, 4)

    # Small deterministic example input, MNIST-like NCHW: [batch=2, 1, 28, 28].
    x = jax.random.normal(k_x, (2, 1, 28, 28), jnp.float32)

    w1, b1 = init_linear(k1, IN_DIM, H1)
    w2, b2 = init_linear(k2, H1, H2)
    w3, b3 = init_linear(k3, H2, OUT)

    out = pc_forward(x, w1, b1, w2, b2, w3, b3)
    out = jax.block_until_ready(out)

    # Pure-JAX f32 reference of the forward semantics (bf16 MXU operands in the
    # kernel loosen the tolerance vs. pure f32).
    xf = x.reshape(x.shape[0], -1)
    h1 = jnp.maximum(xf @ w1 + b1, 0.0)
    h2 = jnp.maximum(h1 @ w2 + b2, 0.0)
    ref = h2 @ w3 + b3
    assert out.shape == (2, OUT)
    assert jnp.allclose(out, ref, atol=5e-2, rtol=5e-2), "mismatch vs JAX reference"

    print("KERNEL_OK")
</pallas_src>

<mosaic_0001>
module attributes {stable_mosaic.version = 11 : i64} {
  func.func @pc_forward_kernel(%arg0: i32, %arg1: memref<8x896xbf16, #tpu.memory_space<vmem>>, %arg2: memref<896x256xbf16, #tpu.memory_space<vmem>>, %arg3: memref<1x256xf32, #tpu.memory_space<vmem>>, %arg4: memref<256x128xbf16, #tpu.memory_space<vmem>>, %arg5: memref<1x128xf32, #tpu.memory_space<vmem>>, %arg6: memref<128x128xbf16, #tpu.memory_space<vmem>>, %arg7: memref<1x128xf32, #tpu.memory_space<vmem>>, %arg8: memref<8x128xf32, #tpu.memory_space<vmem>>) attributes {dimension_semantics = [#tpu.dimension_semantics<parallel>], iteration_bounds = array<i64: 1>, scalar_prefetch = 0 : i64, scratch_operands = 0 : i64, tpu.core_type = #tpu.core_type<tc>, window_params = [{transform_indices = @transform_0, window_bounds = array<i64: 8, 896>}, {pipeline_mode = #tpu.pipeline_mode<synchronous>, transform_indices = @transform_1, window_bounds = array<i64: 896, 256>}, {pipeline_mode = #tpu.pipeline_mode<synchronous>, transform_indices = @transform_2, window_bounds = array<i64: 1, 256>}, {pipeline_mode = #tpu.pipeline_mode<synchronous>, transform_indices = @transform_3, window_bounds = array<i64: 256, 128>}, {pipeline_mode = #tpu.pipeline_mode<synchronous>, transform_indices = @transform_4, window_bounds = array<i64: 1, 128>}, {pipeline_mode = #tpu.pipeline_mode<synchronous>, transform_indices = @transform_5, window_bounds = array<i64: 128, 128>}, {pipeline_mode = #tpu.pipeline_mode<synchronous>, transform_indices = @transform_6, window_bounds = array<i64: 1, 128>}, {transform_indices = @transform_7, window_bounds = array<i64: 8, 128>}]} {
    %c0 = arith.constant 0 : index
    %c0_0 = arith.constant 0 : index
    %0 = vector.load %arg1[%c0, %c0_0] : memref<8x896xbf16, #tpu.memory_space<vmem>>, vector<8x896xbf16>
    %c0_1 = arith.constant 0 : index
    %c0_2 = arith.constant 0 : index
    %1 = vector.load %arg2[%c0_1, %c0_2] : memref<896x256xbf16, #tpu.memory_space<vmem>>, vector<896x256xbf16>
    %cst = arith.constant dense<0.000000e+00> : vector<8x256xf32>
    %2 = tpu.matmul %0, %1, %cst {dimension_numbers = #tpu.dot_dimension_numbers<[1], [0], [0], [1], [0, 0, 1, 1], [], []>} : vector<8x896xbf16>, vector<896x256xbf16>, vector<8x256xf32> -> vector<8x256xf32>
    %c0_3 = arith.constant 0 : index
    %c0_4 = arith.constant 0 : index
    %3 = vector.load %arg3[%c0_3, %c0_4] : memref<1x256xf32, #tpu.memory_space<vmem>>, vector<1x256xf32>
    %4 = vector.broadcast %3 : vector<1x256xf32> to vector<8x256xf32>
    %5 = arith.addf %2, %4 : vector<8x256xf32>
    %cst_5 = arith.constant 0.000000e+00 : f32
    %6 = vector.broadcast %cst_5 : f32 to vector<8x256xf32>
    %7 = arith.maximumf %5, %6 : vector<8x256xf32>
    %8 = arith.truncf %7 : vector<8x256xf32> to vector<8x256xbf16>
    %c0_6 = arith.constant 0 : index
    %c0_7 = arith.constant 0 : index
    %9 = vector.load %arg4[%c0_6, %c0_7] : memref<256x128xbf16, #tpu.memory_space<vmem>>, vector<256x128xbf16>
    %cst_8 = arith.constant dense<0.000000e+00> : vector<8x128xf32>
    %10 = tpu.matmul %8, %9, %cst_8 {dimension_numbers = #tpu.dot_dimension_numbers<[1], [0], [0], [1], [0, 0, 1, 1], [], []>} : vector<8x256xbf16>, vector<256x128xbf16>, vector<8x128xf32> -> vector<8x128xf32>
    %c0_9 = arith.constant 0 : index
    %c0_10 = arith.constant 0 : index
    %11 = vector.load %arg5[%c0_9, %c0_10] : memref<1x128xf32, #tpu.memory_space<vmem>>, vector<1x128xf32>
    %12 = vector.broadcast %11 : vector<1x128xf32> to vector<8x128xf32>
    %13 = arith.addf %10, %12 : vector<8x128xf32>
    %cst_11 = arith.constant 0.000000e+00 : f32
    %14 = vector.broadcast %cst_11 : f32 to vector<8x128xf32>
    %15 = arith.maximumf %13, %14 : vector<8x128xf32>
    %16 = arith.truncf %15 : vector<8x128xf32> to vector<8x128xbf16>
    %c0_12 = arith.constant 0 : index
    %c0_13 = arith.constant 0 : index
    %17 = vector.load %arg6[%c0_12, %c0_13] : memref<128x128xbf16, #tpu.memory_space<vmem>>, vector<128x128xbf16>
    %cst_14 = arith.constant dense<0.000000e+00> : vector<8x128xf32>
    %18 = tpu.matmul %16, %17, %cst_14 {dimension_numbers = #tpu.dot_dimension_numbers<[1], [0], [0], [1], [0, 0, 1, 1], [], []>} : vector<8x128xbf16>, vector<128x128xbf16>, vector<8x128xf32> -> vector<8x128xf32>
    %c0_15 = arith.constant 0 : index
    %c0_16 = arith.constant 0 : index
    %19 = vector.load %arg7[%c0_15, %c0_16] : memref<1x128xf32, #tpu.memory_space<vmem>>, vector<1x128xf32>
    %20 = vector.broadcast %19 : vector<1x128xf32> to vector<8x128xf32>
    %21 = arith.addf %18, %20 : vector<8x128xf32>
    %c0_17 = arith.constant 0 : index
    %c0_18 = arith.constant 0 : index
    %22 = vector.load %arg8[%c0_17, %c0_18] : memref<8x128xf32, #tpu.memory_space<vmem>>, vector<8x128xf32>
    tpu.vector_store %arg8[%c0_17, %c0_18], %21 {strides = array<i32>} : memref<8x128xf32, #tpu.memory_space<vmem>>, vector<8x128xf32>,
    return
  }
  func.func @transform_0(%arg0: i32) -> (i32, i32) {
    %c0_i32 = arith.constant 0 : i32
    %c0_i32_0 = arith.constant 0 : i32
    return %arg0, %c0_i32 : i32, i32
  }
  func.func @transform_1(%arg0: i32) -> (i32, i32) {
    %c0_i32 = arith.constant 0 : i32
    %c0_i32_0 = arith.constant 0 : i32
    %c0_i32_1 = arith.constant 0 : i32
    return %c0_i32, %c0_i32_0 : i32, i32
  }
  func.func @transform_2(%arg0: i32) -> (i32, i32) {
    %c0_i32 = arith.constant 0 : i32
    %c0_i32_0 = arith.constant 0 : i32
    %c0_i32_1 = arith.constant 0 : i32
    return %c0_i32, %c0_i32_0 : i32, i32
  }
  func.func @transform_3(%arg0: i32) -> (i32, i32) {
    %c0_i32 = arith.constant 0 : i32
    %c0_i32_0 = arith.constant 0 : i32
    %c0_i32_1 = arith.constant 0 : i32
    return %c0_i32, %c0_i32_0 : i32, i32
  }
  func.func @transform_4(%arg0: i32) -> (i32, i32) {
    %c0_i32 = arith.constant 0 : i32
    %c0_i32_0 = arith.constant 0 : i32
    %c0_i32_1 = arith.constant 0 : i32
    return %c0_i32, %c0_i32_0 : i32, i32
  }
  func.func @transform_5(%arg0: i32) -> (i32, i32) {
    %c0_i32 = arith.constant 0 : i32
    %c0_i32_0 = arith.constant 0 : i32
    %c0_i32_1 = arith.constant 0 : i32
    return %c0_i32, %c0_i32_0 : i32, i32
  }
  func.func @transform_6(%arg0: i32) -> (i32, i32) {
    %c0_i32 = arith.constant 0 : i32
    %c0_i32_0 = arith.constant 0 : i32
    %c0_i32_1 = arith.constant 0 : i32
    return %c0_i32, %c0_i32_0 : i32, i32
  }
  func.func @transform_7(%arg0: i32) -> (i32, i32) {
    %c0_i32 = arith.constant 0 : i32
    %c0_i32_0 = arith.constant 0 : i32
    return %arg0, %c0_i32 : i32, i32
  }
}

</mosaic_0001>

<bundles_post_ra>
// kernel: pc_forward.1
= control target key start
LH: loop header
LB: loop body
LE: loop exit
PB: predicated region body
PF: predicated region fallthrough
CT: control target
= control target key end

     0   :  { %vm1601_vm0 = vmmov 0   ;;  %s2089_s1 = inlined_call_operand.vmem [shape: bf16[896,256], index: 1, kind: input, shape index: {}]   ;;  %s2090_s0 = inlined_call_operand.vmem [shape: bf16[8,896], index: 0, kind: input, shape index: {}]   ;;  %s2091_s3 = inlined_call_operand.vmem [shape: bf16[256,128], index: 3, kind: input, shape index: {}]   ;;  %s2092_s5 = inlined_call_operand.vmem [shape: bf16[128,128], index: 5, kind: input, shape index: {}]   ;;  %s2093_s2 = inlined_call_operand.vmem [shape: f32[1,256], index: 2, kind: input, shape index: {}]   ;;  %s2094_s4 = inlined_call_operand.vmem [shape: f32[1,128], index: 4, kind: input, shape index: {}]   ;;  %s2095_s6 = inlined_call_operand.vmem [shape: f32[1,128], index: 6, kind: input, shape index: {}]   ;;  %s2096_s7 = inlined_call_operand.vmem [shape: f32[8,128], index: 7, kind: output, shape index: {}]  }
   0x1   :  { %v1400_v0 = vld [vmem:[%s2089_s1 + $0x74] ss:$8 sps:$4 sm:$0xff]   ;;  %v1402_v1 = vld [vmem:[%s2089_s1 + $0x70] ss:$8 sps:$4 sm:$0xff]   ;;  %v1406_v4 = vld [vmem:[%s2089_s1 + $0x64] ss:$8 sps:$4 sm:$0xff]  }
   0x2   :  { %740 = vmatprep.subr.bf16.mxu0 %v1400_v0  ;;  %v1403_v2 = vld [vmem:[%s2089_s1 + $0x174] ss:$8 sps:$4 sm:$0xff]   ;;  %v1405_v3 = vld [vmem:[%s2089_s1 + $0x170] ss:$8 sps:$4 sm:$0xff]   ;;  %v1408_v5 = vld [vmem:[%s2089_s1 + $0x60] ss:$8 sps:$4 sm:$0xff]  }
   0x3   :  { %741 = vmatpush1.bf16.msra.mxu0 %v1402_v1  ;;  %781 = vmatprep.subr.bf16.mxu1 %v1403_v2  ;;  %v1409_v6 = vld [vmem:[%s2089_s1 + $0x164] ss:$8 sps:$4 sm:$0xff]   ;;  %v1411_v7 = vld [vmem:[%s2089_s1 + $0x160] ss:$8 sps:$4 sm:$0xff]   ;;  %v1412_v8 = vld [vmem:[%s2089_s1 + $0x54] ss:$8 sps:$4 sm:$0xff]  }
   0x4   :  { %782 = vmatpush1.bf16.msra.mxu1 %v1405_v3  ;;  %742 = vmatprep.subr.bf16.mxu0 %v1406_v4  ;;  %v1414_v9 = vld [vmem:[%s2089_s1 + $0x50] ss:$8 sps:$4 sm:$0xff]   ;;  %v1415_v10 = vld [vmem:[%s2089_s1 + $0x154] ss:$8 sps:$4 sm:$0xff]   ;;  %v1418_v11 = vld [vmem:[%s2089_s1 + $0x44] ss:$8 sps:$4 sm:$0xff]  }
   0x5   :  { %783 = vmatprep.subr.bf16.mxu1 %v1409_v6  ;;  %v1417_v12 = vld [vmem:[%s2089_s1 + $0x150] ss:$8 sps:$4 sm:$0xff]   ;;  %v1421_v13 = vld [vmem:[%s2089_s1 + $0x144] ss:$8 sps:$4 sm:$0xff]   ;;  %v1420_v14 = vld [vmem:[%s2089_s1 + $0x40] ss:$8 sps:$4 sm:$0xff]  }
   0x6   :  { %v1424_v15 = vld [vmem:[%s2089_s1 + $0x34] ss:$8 sps:$4 sm:$0xff]   ;;  %v1423_v16 = vld [vmem:[%s2089_s1 + $0x140] ss:$8 sps:$4 sm:$0xff]   ;;  %v1426_v18 = vld [vmem:[%s2089_s1 + $0x30] ss:$8 sps:$4 sm:$0xff]  }
   0x7   :  { %743 = vmatpush1.bf16.msra.mxu0 %v1408_v5  ;;  %v1427_v17 = vld [vmem:[%s2089_s1 + $0x134] ss:$8 sps:$4 sm:$0xff]   ;;  %v1430_v19 = vld [vmem:[%s2089_s1 + $0x24] ss:$8 sps:$4 sm:$0xff]   ;;  %v1429_v20 = vld [vmem:[%s2089_s1 + $0x130] ss:$8 sps:$4 sm:$0xff]  }
   0x8   :  { %744 = vmatprep.subr.bf16.mxu0 %v1412_v8  ;;  %784 = vmatpush1.bf16.msra.mxu1 %v1411_v7  ;;  %v1433_v21 = vld [vmem:[%s2089_s1 + $0x124] ss:$8 sps:$4 sm:$0xff]   ;;  %v1432_v22 = vld [vmem:[%s2089_s1 + $0x20] ss:$8 sps:$4 sm:$0xff]   ;;  %v1436_v23 = vld [vmem:[%s2089_s1 + $0x14] ss:$8 sps:$4 sm:$0xff]  }
   0x9   :  { %785 = vmatprep.subr.bf16.mxu1 %v1415_v10  ;;  %v1435_v24 = vld [vmem:[%s2089_s1 + $0x120] ss:$8 sps:$4 sm:$0xff]   ;;  %v1439_v25 = vld [vmem:[%s2089_s1 + $0x114] ss:$8 sps:$4 sm:$0xff]   ;;  %v1438_v26 = vld [vmem:[%s2089_s1 + $0x10] ss:$8 sps:$4 sm:$0xff]  }
   0xa   :  { %v1442_v27 = vld [vmem:[%s2089_s1 + $0x4] ss:$8 sps:$4 sm:$0xff]   ;;  %v1441_v28 = vld [vmem:[%s2089_s1 + $0x110] ss:$8 sps:$4 sm:$0xff]   ;;  %v1444_v30 = vld [vmem:[%s2089_s1] ss:$8 sps:$4 sm:$0xff]  }
   0xb   :  { %745 = vmatpush1.bf16.msra.mxu0 %v1414_v9  ;;  %v1445_v29 = vld [vmem:[%s2089_s1 + $0x104] ss:$8 sps:$4 sm:$0xff]   ;;  %v1448_v31 = vld [vmem:[%s2089_s1 + $0xf4] ss:$8 sps:$4 sm:$0xff]   ;;  %v1447_v32 = vld [vmem:[%s2089_s1 + $0x100] ss:$8 sps:$4 sm:$0xff]  }
   0xc   :  { %746 = vmatprep.subr.bf16.mxu0 %v1418_v11  ;;  %786 = vmatpush1.bf16.msra.mxu1 %v1417_v12  ;;  %v1451_v33 = vld [vmem:[%s2089_s1 + $0x1f4] ss:$8 sps:$4 sm:$0xff]   ;;  %v1450_v34 = vld [vmem:[%s2089_s1 + $0xf0] ss:$8 sps:$4 sm:$0xff]   ;;  %v1454_v35 = vld [vmem:[%s2089_s1 + $0xe4] ss:$8 sps:$4 sm:$0xff]  }
   0xd   :  { %787 = vmatprep.subr.bf16.mxu1 %v1421_v13  ;;  %v1453_v36 = vld [vmem:[%s2089_s1 + $0x1f0] ss:$8 sps:$4 sm:$0xff]   ;;  %v1457_v37 = vld [vmem:[%s2089_s1 + $0x1e4] ss:$8 sps:$4 sm:$0xff]   ;;  %v1456_v38 = vld [vmem:[%s2089_s1 + $0xe0] ss:$8 sps:$4 sm:$0xff]  }
   0xe   :  { %v1460_v39 = vld [vmem:[%s2089_s1 + $0xd4] ss:$8 sps:$4 sm:$0xff]   ;;  %v1459_v40 = vld [vmem:[%s2089_s1 + $0x1e0] ss:$8 sps:$4 sm:$0xff]   ;;  %v1462_v42 = vld [vmem:[%s2089_s1 + $0xd0] ss:$8 sps:$4 sm:$0xff]  }
   0xf   :  { %747 = vmatpush1.bf16.msra.mxu0 %v1420_v14  ;;  %v1463_v41 = vld [vmem:[%s2089_s1 + $0x1d4] ss:$8 sps:$4 sm:$0xff]   ;;  %v1466_v43 = vld [vmem:[%s2089_s1 + $0xc4] ss:$8 sps:$4 sm:$0xff]   ;;  %v1465_v44 = vld [vmem:[%s2089_s1 + $0x1d0] ss:$8 sps:$4 sm:$0xff]  }
  0x10   :  { %748 = vmatprep.subr.bf16.mxu0 %v1424_v15  ;;  %788 = vmatpush1.bf16.msra.mxu1 %v1423_v16  ;;  %v1469_v45 = vld [vmem:[%s2089_s1 + $0x1c4] ss:$8 sps:$4 sm:$0xff]   ;;  %v1468_v47 = vld [vmem:[%s2089_s1 + $0xc0] ss:$8 sps:$4 sm:$0xff]   ;;  %v1472_v49 = vld [vmem:[%s2089_s1 + $0xb4] ss:$8 sps:$4 sm:$0xff]  }
  0x11   :  { %789 = vmatprep.subr.bf16.mxu1 %v1427_v17  ;;  %v27_v46 = vld [vmem:[%s2090_s0] sm:$0xff]  ;;  %v28_v50 = vld [vmem:[%s2090_s0 + $0x8] sm:$0xff]  ;;  %v1475_v53 = vld [vmem:[%s2089_s1 + $0x1b4] ss:$8 sps:$4 sm:$0xff]   ;;  %v1599_v15 = vmov 0  }
  0x12   :  { %v1202_v48 = vcombine.high %v27_v46, %v27_v46  ;;  %v1471_v51 = vld [vmem:[%s2089_s1 + $0x1c0] ss:$8 sps:$4 sm:$0xff]   ;;  %v1204_v52 = vcombine.high %v28_v50, %v28_v50  ;;  %v1474_v54 = vld [vmem:[%s2089_s1 + $0xb0] ss:$8 sps:$4 sm:$0xff]   ;;  %v1478_v55 = vld [vmem:[%s2089_s1 + $0xa4] ss:$8 sps:$4 sm:$0xff]   ;;  %v1201_v5 = vcombine.low %v27_v46, %v27_v46  ;;  %v1203_v8 = vcombine.low %v28_v50, %v28_v50 }
  0x13   :  { %749 = vmatpush1.bf16.msra.mxu0 %v1426_v18  ;;  %v1477_v56 = vld [vmem:[%s2089_s1 + $0x1b0] ss:$8 sps:$4 sm:$0xff]   ;;  %v1481_v57 = vld [vmem:[%s2089_s1 + $0x1a4] ss:$8 sps:$4 sm:$0xff]   ;;  %v1480_v58 = vld [vmem:[%s2089_s1 + $0xa0] ss:$8 sps:$4 sm:$0xff]  }
  0x14   :  { %750 = vmatprep.subr.bf16.mxu0 %v1430_v19  ;;  %790 = vmatpush1.bf16.msra.mxu1 %v1429_v20  ;;  %v1484_v59 = vld [vmem:[%s2089_s1 + $0x94] ss:$8 sps:$4 sm:$0xff]   ;;  %v1483_v60 = vld [vmem:[%s2089_s1 + $0x1a0] ss:$8 sps:$4 sm:$0xff]   ;;  %v1486_v62 = vld [vmem:[%s2089_s1 + $0x90] ss:$8 sps:$4 sm:$0xff]  }
  0x15   :  { %791 = vmatprep.subr.bf16.mxu1 %v1433_v21  ;;  %772 = vmatprep.mubr.bf16.mxu0 %v1202_v48  ;;  %v1487_v61 = vld [vmem:[%s2089_s1 + $0x194] ss:$8 sps:$4 sm:$0xff]   ;;  %v1490_v63 = vld [vmem:[%s2089_s1 + $0x84] ss:$8 sps:$4 sm:$0xff]   ;;  %v1489_v0 = vld [vmem:[%s2089_s1 + $0x190] ss:$8 sps:$4 sm:$0xff]  }
  0x16   :  { %813 = vmatprep.mubr.bf16.mxu1 %v1204_v52  ;;  %v1493_v1 = vld [vmem:[%s2089_s1 + $0x184] ss:$8 sps:$4 sm:$0xff]   ;;  %v1492_v2 = vld [vmem:[%s2089_s1 + $0x80] ss:$8 sps:$4 sm:$0xff]   ;;  %v1500_v3 = vld [vmem:[%s2089_s1 + $0x274] ss:$8 sps:$4 sm:$0xff]  }
  0x17   :  { %751 = vmatpush1.bf16.msra.mxu0 %v1432_v22  ;;  %v1497_v4 = vld [vmem:[%s2089_s1 + $0x180] ss:$8 sps:$4 sm:$0xff]   ;;  %v1526_v6 = vld [vmem:[%s2089_s1 + $0x374] ss:$8 sps:$4 sm:$0xff]   ;;  %v1498_v7 = vld [vmem:[%s2089_s1 + $0x270] ss:$8 sps:$4 sm:$0xff]  }
  0x18   :  { %752 = vmatprep.subr.bf16.mxu0 %v1436_v23  ;;  %792 = vmatpush1.bf16.msra.mxu1 %v1435_v24  ;;  %v1505_v9 = vld [vmem:[%s2089_s1 + $0x264] ss:$8 sps:$4 sm:$0xff]   ;;  %v1524_v10 = vld [vmem:[%s2089_s1 + $0x370] ss:$8 sps:$4 sm:$0xff]   ;;  %v1503_v12 = vld [vmem:[%s2089_s1 + $0x260] ss:$8 sps:$4 sm:$0xff]  }
  0x19   :  { %793 = vmatprep.subr.bf16.mxu1 %v1439_v25  ;;  %v1532_v11 = vld [vmem:[%s2089_s1 + $0x364] ss:$8 sps:$4 sm:$0xff]   ;;  %v1508_v13 = vld [vmem:[%s2089_s1 + $0x254] ss:$8 sps:$4 sm:$0xff]   ;;  %v1530_v14 = vld [vmem:[%s2089_s1 + $0x360] ss:$8 sps:$4 sm:$0xff]  }
  0x1a   :  { %v1538_v16 = vld [vmem:[%s2089_s1 + $0x354] ss:$8 sps:$4 sm:$0xff]   ;;  %v1506_v17 = vld [vmem:[%s2089_s1 + $0x250] ss:$8 sps:$4 sm:$0xff]   ;;  %v1511_v18 = vld [vmem:[%s2089_s1 + $0x244] ss:$8 sps:$4 sm:$0xff]  }
  0x1b   :  { %753 = vmatpush1.bf16.msra.mxu0 %v1438_v26  ;;  %v1536_v19 = vld [vmem:[%s2089_s1 + $0x350] ss:$8 sps:$4 sm:$0xff]   ;;  %v1544_v20 = vld [vmem:[%s2089_s1 + $0x344] ss:$8 sps:$4 sm:$0xff]   ;;  %v1509_v21 = vld [vmem:[%s2089_s1 + $0x240] ss:$8 sps:$4 sm:$0xff]  }
  0x1c   :  { %754 = vmatprep.subr.bf16.mxu0 %v1442_v27  ;;  %794 = vmatpush1.bf16.msra.mxu1 %v1441_v28  ;;  %v1514_v22 = vld [vmem:[%s2089_s1 + $0x234] ss:$8 sps:$4 sm:$0xff]   ;;  %v1542_v24 = vld [vmem:[%s2089_s1 + $0x340] ss:$8 sps:$4 sm:$0xff]   ;;  %v1512_v27 = vld [vmem:[%s2089_s1 + $0x230] ss:$8 sps:$4 sm:$0xff]  }
  0x1d   :  { %795 = vmatprep.subr.bf16.mxu1 %v1445_v29  ;;  %v1891_v23 = vld [vmem:[%s2090_s0 + $0x10] sm:$0xff]  ;;  %v1517_v28 = vld [vmem:[%s2089_s1 + $0x224] ss:$8 sps:$4 sm:$0xff]  }
  0x1e   :  { %v1206_v25 = vcombine.high %v1891_v23, %v1891_v23  ;;  %v1550_v26 = vld [vmem:[%s2089_s1 + $0x334] ss:$8 sps:$4 sm:$0xff]   ;;  %v1548_v29 = vld [vmem:[%s2089_s1 + $0x330] ss:$8 sps:$4 sm:$0xff]   ;;  %v1547_v48 = vld [vmem:[%s2089_s1 + $0x2c4] ss:$8 sps:$4 sm:$0xff]  }
  0x1f   :  { %755 = vmatpush1.bf16.msra.mxu0 %v1444_v30  ;;  %v1556_v30 = vld [vmem:[%s2089_s1 + $0x324] ss:$8 sps:$4 sm:$0xff]   ;;  %v1541_v46 = vld [vmem:[%s2089_s1 + $0x2d4] ss:$8 sps:$4 sm:$0xff]  }
  0x20   :  { %756 = vmatprep.subr.bf16.mxu0 %v1448_v31  ;;  %796 = vmatpush1.bf16.msra.mxu1 %v1447_v32  ;;  %v1515_v31 = vld [vmem:[%s2089_s1 + $0x220] ss:$8 sps:$4 sm:$0xff]   ;;  %v1520_v32 = vld [vmem:[%s2089_s1 + $0x214] ss:$8 sps:$4 sm:$0xff]   ;;  %v1559_v52 = vld [vmem:[%s2089_s1 + $0x2a4] ss:$8 sps:$4 sm:$0xff]  }
  0x21   :  { %797 = vmatprep.subr.bf16.mxu1 %v1451_v33  ;;  %v1554_v33 = vld [vmem:[%s2089_s1 + $0x320] ss:$8 sps:$4 sm:$0xff]   ;;  %v1553_v50 = vld [vmem:[%s2089_s1 + $0x2b4] ss:$8 sps:$4 sm:$0xff]  }
  0x23   :  { %757 = vmatpush2.bf16.msra.mxu0 %v1450_v34  ;;  %v1562_v34 = vld [vmem:[%s2089_s1 + $0x314] ss:$8 sps:$4 sm:$0xff]  }
  0x24   :  { %758 = vmatprep.subr.bf16.mxu0 %v1454_v35  ;;  %798 = vmatpush2.bf16.msra.mxu1 %v1453_v36  ;;  %v1518_v35 = vld [vmem:[%s2089_s1 + $0x210] ss:$8 sps:$4 sm:$0xff]   ;;  %v1523_v36 = vld [vmem:[%s2089_s1 + $0x204] ss:$8 sps:$4 sm:$0xff]  }
  0x25   :  { %799 = vmatprep.subr.bf16.mxu1 %v1457_v37  ;;  %v1560_v37 = vld [vmem:[%s2089_s1 + $0x310] ss:$8 sps:$4 sm:$0xff]  }
  0x27   :  { %759 = vmatpush2.bf16.msra.mxu0 %v1456_v38  ;;  %v1568_v38 = vld [vmem:[%s2089_s1 + $0x304] ss:$8 sps:$4 sm:$0xff]  }
  0x28   :  { %760 = vmatprep.subr.bf16.mxu0 %v1460_v39  ;;  %800 = vmatpush2.bf16.msra.mxu1 %v1459_v40  ;;  %v1521_v39 = vld [vmem:[%s2089_s1 + $0x200] ss:$8 sps:$4 sm:$0xff]   ;;  %v1529_v40 = vld [vmem:[%s2089_s1 + $0x2f4] ss:$8 sps:$4 sm:$0xff]  }
  0x29   :  { %801 = vmatprep.subr.bf16.mxu1 %v1463_v41  ;;  %v1566_v41 = vld [vmem:[%s2089_s1 + $0x300] ss:$8 sps:$4 sm:$0xff]  }
  0x2b   :  { %761 = vmatpush2.bf16.msra.mxu0 %v1462_v42  ;;  %v1527_v42 = vld [vmem:[%s2089_s1 + $0x2f0] ss:$8 sps:$4 sm:$0xff]  }
  0x2c   :  { %762 = vmatprep.subr.bf16.mxu0 %v1466_v43  ;;  %802 = vmatpush2.bf16.msra.mxu1 %v1465_v44  ;;  %v1535_v43 = vld [vmem:[%s2089_s1 + $0x2e4] ss:$8 sps:$4 sm:$0xff]   ;;  %v1572_v44 = vld [vmem:[%s2090_s0 + $0x18] ss:$0 sps:$4 sm:$0xff]  }
  0x2d   :  { %803 = vmatprep.subr.bf16.mxu1 %v1469_v45  ;;  %v1533_v45 = vld [vmem:[%s2089_s1 + $0x2e0] ss:$8 sps:$4 sm:$0xff]  }
  0x2f   :  { %763 = vmatpush2.bf16.msra.mxu0 %v1468_v47  ;;  %v1539_v47 = vld [vmem:[%s2089_s1 + $0x2d0] ss:$8 sps:$4 sm:$0xff]  }
  0x30   :  { %764 = vmatprep.subr.bf16.mxu0 %v1472_v49  ;;  %804 = vmatpush2.bf16.msra.mxu1 %v1471_v51  ;;  %v1545_v49 = vld [vmem:[%s2089_s1 + $0x2c0] ss:$8 sps:$4 sm:$0xff]   ;;  %v1551_v51 = vld [vmem:[%s2089_s1 + $0x2b0] ss:$8 sps:$4 sm:$0xff]  }
  0x31   :  { %805 = vmatprep.subr.bf16.mxu1 %v1475_v53  ;;  %v1557_v53 = vld [vmem:[%s2089_s1 + $0x2a0] ss:$8 sps:$4 sm:$0xff]  }
  0x33   :  { %765 = vmatpush2.bf16.msra.mxu0 %v1474_v54  ;;  %v1565_v54 = vld [vmem:[%s2089_s1 + $0x294] ss:$8 sps:$4 sm:$0xff]  }
  0x34   :  { %766 = vmatprep.subr.bf16.mxu0 %v1478_v55  ;;  %806 = vmatpush2.bf16.msra.mxu1 %v1477_v56  ;;  %v1563_v55 = vld [vmem:[%s2089_s1 + $0x290] ss:$8 sps:$4 sm:$0xff]   ;;  %v1571_v56 = vld [vmem:[%s2089_s1 + $0x284] ss:$8 sps:$4 sm:$0xff]  }
  0x35   :  { %807 = vmatprep.subr.bf16.mxu1 %v1481_v57  ;;  %v1569_v57 = vld [vmem:[%s2089_s1 + $0x280] ss:$8 sps:$4 sm:$0xff]  }
  0x37   :  { %767 = vmatpush2.bf16.msra.mxu0 %v1480_v58  ;;  %v1205_v58 = vcombine.low %v1891_v23, %v1891_v23 }
  0x38   :  { %768 = vmatprep.subr.bf16.mxu0 %v1484_v59  ;;  %808 = vmatpush2.bf16.msra.mxu1 %v1483_v60  ;;  %v1575_v59 = vld [vmem:[%s2091_s3 + $0x78] sm:$0xff]  }
  0x39   :  { %809 = vmatprep.subr.bf16.mxu1 %v1487_v61  ;;  %v1576_v60 = vld [vmem:[%s2091_s3 + $0x38] sm:$0xff]   ;;  %v1577_v61 = vld [vmem:[%s2091_s3 + $0x70] sm:$0xff]  }
  0x3b   :  { %769 = vmatpush2.bf16.msra.mxu0 %v1486_v62  ;;  %v1578_v62 = vld [vmem:[%s2091_s3 + $0x30] sm:$0xff]  }
  0x3c   :  { %770 = vmatprep.subr.bf16.mxu0 %v1490_v63  ;;  %810 = vmatpush2.bf16.msra.mxu1 %v1489_v0  ;;  %v1579_v63 = vld [vmem:[%s2091_s3 + $0x68] sm:$0xff]  }
  0x3d   :  { %811 = vmatprep.subr.bf16.mxu1 %v1493_v1  ;;  %v1580_v0 = vld [vmem:[%s2091_s3 + $0x28] sm:$0xff]   ;;  %v1581_v1 = vld [vmem:[%s2091_s3 + $0x60] sm:$0xff]  }
  0x3f   :  { %771 = vmatpush2.bf16.msra.mxu0 %v1492_v2  ;;  %v1582_v2 = vld [vmem:[%s2091_s3 + $0x20] sm:$0xff]  }
  0x40   :  { %822 = vmatprep.subr.bf16.mxu0 %v1500_v3  ;;  %812 = vmatpush2.bf16.msra.mxu1 %v1497_v4  ;;  %v1583_v3 = vld [vmem:[%s2091_s3 + $0x58] sm:$0xff]  }
  0x41   :  { %863 = vmatprep.subr.bf16.mxu1 %v1526_v6  ;;  %v1584_v4 = vld [vmem:[%s2091_s3 + $0x18] sm:$0xff]   ;;  %v1586_v6 = vld [vmem:[%s2091_s3 + $0x10] sm:$0xff]  }
  0x42   :  { %773 = vmatmul.mubr.bf16.vlgmr.msra.gmra.mxu0 %v1201_v5  ;;  %v1585_v5 = vld [vmem:[%s2091_s3 + $0x50] sm:$0xff]  }
  0x43   :  { %823 = vmatpush1.bf16.msra.mxu0 %v1498_v7  ;;  %814 = vmatmul.mubr.bf16.vlgmr.msra.gmra.mxu1 %v1203_v8  ;;  %v1587_v7 = vld [vmem:[%s2091_s3 + $0x48] sm:$0xff]  }
  0x44   :  { %824 = vmatprep.subr.bf16.mxu0 %v1505_v9  ;;  %864 = vmatpush1.bf16.msra.mxu1 %v1524_v10  ;;  %v1588_v8 = vld [vmem:[%s2091_s3 + $0x8] sm:$0xff]   ;;  %v1589_v9 = vld [vmem:[%s2091_s3 + $0x40] sm:$0xff]  }
  0x45   :  { %895 = vmatprep.mubr.bf16.mxu1 %v1599_v15  ;;  %865 = vmatprep.subr.bf16.mxu1 %v1532_v11  ;;  %v1590_v10 = vld [vmem:[%s2091_s3] sm:$0xff]   ;;  %v1600_v11 = vmov 0.0  }
  0x46   :  { %854 = vmatprep.mubr.bf16.mxu0 %v1206_v25  ;;  %v1594_v15 = vld [vmem:[%s2092_s5 + $0x20] sm:$0xff]  }
  0x47   :  { %825 = vmatpush1.bf16.msra.mxu0 %v1503_v12  ;;  %v1591_v12 = vld [vmem:[%s2092_s5 + $0x38] sm:$0xff]  }
  0x48   :  { %826 = vmatprep.subr.bf16.mxu0 %v1508_v13  ;;  %866 = vmatpush1.bf16.msra.mxu1 %v1530_v14  ;;  %v1592_v13 = vld [vmem:[%s2092_s5 + $0x30] sm:$0xff]   ;;  %v1593_v14 = vld [vmem:[%s2092_s5 + $0x28] sm:$0xff]  }
  0x49   :  { %867 = vmatprep.subr.bf16.mxu1 %v1538_v16  ;;  %v1595_v16 = vld [vmem:[%s2092_s5 + $0x18] sm:$0xff]  }
  0x4b   :  { %827 = vmatpush1.bf16.msra.mxu0 %v1506_v17 }
  0x4c   :  { %828 = vmatprep.subr.bf16.mxu0 %v1511_v18  ;;  %868 = vmatpush1.bf16.msra.mxu1 %v1536_v19 }
  0x4d   :  { %869 = vmatprep.subr.bf16.mxu1 %v1544_v20 }
  0x4f   :  { %829 = vmatpush1.bf16.msra.mxu0 %v1509_v21 }
  0x50   :  { %830 = vmatprep.subr.bf16.mxu0 %v1514_v22  ;;  %870 = vmatpush1.bf16.msra.mxu1 %v1542_v24 }
  0x51   :  { %871 = vmatprep.subr.bf16.mxu1 %v1550_v26 }
  0x53   :  { %831 = vmatpush1.bf16.msra.mxu0 %v1512_v27 }
  0x54   :  { %832 = vmatprep.subr.bf16.mxu0 %v1517_v28  ;;  %872 = vmatpush1.bf16.msra.mxu1 %v1548_v29  ;;  %v145_v29 = vlaneseq }
  0x55   :  { %873 = vmatprep.subr.bf16.mxu1 %v1556_v30 }
  0x56   :  { %v146_v30 = vshrl.u32 %v145_v29, 7 }
  0x57   :  { %833 = vmatpush1.bf16.msra.mxu0 %v1515_v31 }
  0x58   :  { %834 = vmatprep.subr.bf16.mxu0 %v1520_v32  ;;  %874 = vmatpush1.bf16.msra.mxu1 %v1554_v33  ;;  %v147_v31 = vsub.s32 0, %v146_v30  ;;  %v143_v32 = vld [vmem:[%s2093_s2] sm:$0x3]  ;;  %v151_v33 = vsub.s32 1, %v146_v30 }
  0x59   :  { %875 = vmatprep.subr.bf16.mxu1 %v1562_v34 }
  0x5a   :  { %v148_v34 = vrot.slane %v143_v32, %v147_v31 }
  0x5b   :  { %835 = vmatpush1.bf16.msra.mxu0 %v1518_v35  ;;  %v152_v35 = vrot.slane %v143_v32, %v151_v33 }
  0x5c   :  { %836 = vmatprep.subr.bf16.mxu0 %v1523_v36  ;;  %876 = vmatpush1.bf16.msra.mxu1 %v1560_v37 }
  0x5d   :  { %877 = vmatprep.subr.bf16.mxu1 %v1568_v38 }
  0x5f   :  { %837 = vmatpush1.bf16.msra.mxu0 %v1521_v39 }
  0x60   :  { %838 = vmatprep.subr.bf16.mxu0 %v1529_v40  ;;  %878 = vmatpush1.bf16.msra.mxu1 %v1566_v41 }
  0x61   :  { %1346 = vmatprep.subr.bf16.mxu1 %v1575_v59 }
  0x63   :  { %839 = vmatpush2.bf16.msra.mxu0 %v1527_v42  ;;  %896 = vmatmul.mubr.bf16.vlgmr.msra.gmra.mxu1 %v1572_v44 }
  0x64   :  { %840 = vmatprep.subr.bf16.mxu0 %v1535_v43  ;;  %1347 = vmatpush3.bf16.msra.mxu1 %v1576_v60 }
  0x65   :  { %1348 = vmatprep.subr.bf16.mxu1 %v1577_v61 }
  0x67   :  { %841 = vmatpush2.bf16.msra.mxu0 %v1533_v45 }
  0x68   :  { %842 = vmatprep.subr.bf16.mxu0 %v1541_v46  ;;  %1349 = vmatpush3.bf16.msra.mxu1 %v1578_v62 }
  0x69   :  { %1350 = vmatprep.subr.bf16.mxu1 %v1579_v63 }
  0x6b   :  { %843 = vmatpush2.bf16.msra.mxu0 %v1539_v47 }
  0x6c   :  { %844 = vmatprep.subr.bf16.mxu0 %v1547_v48  ;;  %1351 = vmatpush3.bf16.msra.mxu1 %v1580_v0  ;;  %v1337_v0 = vld [vmem:[%s2095_s6] ss:$0 sm:$0xff] }
  0x6d   :  { %1352 = vmatprep.subr.bf16.mxu1 %v1581_v1 }
  0x6f   :  { %845 = vmatpush2.bf16.msra.mxu0 %v1545_v49 }
  0x70   :  { %846 = vmatprep.subr.bf16.mxu0 %v1553_v50  ;;  %1353 = vmatpush3.bf16.msra.mxu1 %v1582_v2 }
  0x71   :  { %1354 = vmatprep.subr.bf16.mxu1 %v1583_v3 }
  0x73   :  { %847 = vmatpush2.bf16.msra.mxu0 %v1551_v51 }
  0x74   :  { %848 = vmatprep.subr.bf16.mxu0 %v1559_v52  ;;  %1355 = vmatpush3.bf16.msra.mxu1 %v1584_v4  ;;  %v1596_v52 = vld [vmem:[%s2092_s5 + $0x10] sm:$0xff]  }
  0x75   :  { %1356 = vmatprep.subr.bf16.mxu1 %v1585_v5 }
  0x77   :  { %849 = vmatpush2.bf16.msra.mxu0 %v1557_v53  ;;  %v1597_v53 = vld [vmem:[%s2092_s5 + $0x8] sm:$0xff]  }
  0x78   :  { %850 = vmatprep.subr.bf16.mxu0 %v1565_v54  ;;  %1357 = vmatpush3.bf16.msra.mxu1 %v1586_v6  ;;  %v1598_v54 = vld [vmem:[%s2092_s5] sm:$0xff]  }
  0x79   :  { %1358 = vmatprep.subr.bf16.mxu1 %v1587_v7 }
  0x7b   :  { %851 = vmatpush2.bf16.msra.mxu0 %v1563_v55 }
  0x7c   :  { %852 = vmatprep.subr.bf16.mxu0 %v1571_v56  ;;  %1359 = vmatpush3.bf16.msra.mxu1 %v1588_v8  ;;  %v1320_v56 = vld [vmem:[%s2094_s4] ss:$0 sm:$0xff] }
  0x7d   :  { %1360 = vmatprep.subr.bf16.mxu1 %v1589_v9 }
  0x7f   :  { %853 = vmatpush2.bf16.msra.mxu0 %v1569_v57 }
  0x80   :  { %1361 = vmatpush3.bf16.msra.mxu1 %v1590_v10  ;;  %1377 = vmatprep.subr.bf16.mxu0 %v1600_v11 }
  0x82   :  { %855 = vmatmul.mubr.bf16.vlgmr.msra.gmra.mxu0 %v1205_v58 }
  0x83   :  { %1378 = vmatpush3.bf16.msra.mxu0 %v1591_v12  ;;  %1393 = vmatprep.mubr.msk.bf16.mxu0 %vm1601_vm0, %v1600_v11 }
  0x84   :  { %1379 = vmatprep.subr.bf16.mxu0 %v1600_v11 }
  0x87   :  { %1380 = vmatpush3.bf16.msra.mxu0 %v1592_v13 }
  0x88   :  { %1381 = vmatprep.subr.bf16.mxu0 %v1600_v11 }
  0x8b   :  { %1382 = vmatpush3.bf16.msra.mxu0 %v1593_v14 }
  0x8c   :  { %1383 = vmatprep.subr.bf16.mxu0 %v1600_v11 }
  0x8f   :  { %1384 = vmatpush3.bf16.msra.mxu0 %v1594_v15 }
  0x90   :  { %1385 = vmatprep.subr.bf16.mxu0 %v1600_v11 }
  0x93   :  { %1386 = vmatpush3.bf16.msra.mxu0 %v1595_v16 }
  0x94   :  { %1387 = vmatprep.subr.bf16.mxu0 %v1600_v11 }
  0x97   :  { %1388 = vmatpush3.bf16.msra.mxu0 %v1596_v52 }
  0x98   :  { %1389 = vmatprep.subr.bf16.mxu0 %v1600_v11 }
  0x9b   :  { %1390 = vmatpush3.bf16.msra.mxu0 %v1597_v53 }
  0x9c   :  { %1391 = vmatprep.subr.bf16.mxu0 %v1600_v11 }
  0x9f   :  { %1392 = vmatpush3.bf16.msra.mxu0 %v1598_v54 }
 0x102   :  { %v774_v17 = vpop.f32.mrf.mxu0 }
 0x103   :  { %v815_v19 = vpop.f32.mrf.mxu1  ;;  %v775_v36 = vadd.f32 %v774_v17, %v148_v34 }
 0x104   :  { %v776_v18 = vpop.f32.mrf.mxu0 }
 0x105   :  { %v817_v21 = vpop.f32.mrf.mxu1  ;;  %v777_v37 = vadd.f32 %v776_v18, %v152_v35  ;;  %v816_v38 = vadd.f32 %v815_v19, %v775_v36 }
 0x106   :  { %v778_v20 = vpop.f32.mrf.mxu0 }
 0x107   :  { %v819_v23 = vpop.f32.mrf.mxu1  ;;  %v818_v40 = vadd.f32 %v817_v21, %v777_v37 }
 0x108   :  { %v779_v22 = vpop.f32.mrf.mxu0 }
 0x109   :  { %v820_v24 = vpop.f32.mrf.mxu1 }
 0x123   :  { %v897_v25 = vpop.f32.mrf.mxu1 }
 0x125   :  { %v899_v26 = vpop.f32.mrf.mxu1 }
 0x127   :  { %v901_v27 = vpop.f32.mrf.mxu1 }
 0x129   :  { %v902_v28 = vpop.f32.mrf.mxu1 }
 0x142   :  { %v856_v39 = vpop.f32.mrf.mxu0 }
 0x143   :  { %v857_v41 = vadd.f32 %v856_v39, %v816_v38 }
 0x144   :  { %v858_v42 = vpop.f32.mrf.mxu0 }
 0x145   :  { %v898_v43 = vadd.f32 %v897_v25, %v857_v41  ;;  %v859_v44 = vadd.f32 %v858_v42, %v818_v40 }
 0x146   :  { %v860_v45 = vpop.f32.mrf.mxu0 }
 0x147   :  { %v900_v46 = vadd.f32 %v899_v26, %v859_v44  ;;  %v904_v47 = vmax.f32 %v898_v43, 0.0 }
 0x148   :  { %v861_v48 = vpop.f32.mrf.mxu0 }
 0x149   :  { %v905_v49 = vmax.f32 %v900_v46, 0.0  ;;  %v906_v51 = vpack.c.bf16 %v904_v47, %v904_v47 }
 0x14b   :  { %v907_v50 = vpack.c.bf16 %v905_v49, %v905_v49 }
 0x14d   :  { %1075 = vmatprep.mubr.bf16.mxu1 %v907_v50 }
 0x14e   :  { %1076 = vmatmul.mubr.bf16.vlgmr.msra.gmra.mxu1 %v906_v51 }
 0x20e   :  { %v1362_v55 = vpop.f32.mrf.mxu1 }
 0x210   :  { %v1363_v57 = vpop.f32.mrf.mxu1 }
 0x211   :  { %v1364_v58 = vadd.f32 %v1363_v57, %v1362_v55 }
 0x212   :  { %v1365_v59 = vpop.f32.mrf.mxu1 }
 0x213   :  { %v1078_v60 = vadd.f32 %v1364_v58, %v1320_v56 }
 0x214   :  { %v1366_v61 = vpop.f32.mrf.mxu1 }
 0x215   :  { %v1083_v62 = vmax.f32 %v1078_v60, 0.0 }
 0x217   :  { %v1084_v63 = vpack.c.bf16 %v1083_v62, %v1083_v62 }
 0x219   :  { %1394 = vmatmul.mubr.bf16.vlgmr.msra.gmra.mxu0 %v1084_v63 }
 0x2d9   :  { %v1190_v1 = vpop.f32.mrf.mxu0 }
 0x2da   :  { %v1191_v2 = vadd.f32 %v1337_v0, %v1190_v1 }
 0x2db   :  { %v1395_v3 = vpop.f32.mrf.mxu0 }
 0x2dc   :  { %1196 = vst [vmem:[%s2096_s7] sm:$0xff] %v1191_v2 }
 0x2dd   :  { %v1193_v4 = vpop.f32.mrf.mxu0 }
 0x2df   :  { %v1396_v5 = vpop.f32.mrf.mxu0 }

</bundles_post_ra>
